<compile_context>
chip_gen: v6e
topology: v6e:2x2x1
jax: 0.10.0
libtpu: 0.0.40
codegen_flags: <defaults>
</compile_context>

<pallas_src>
import jax
import jax.numpy as jnp
from jax.experimental import pallas as pl
from jax.experimental.pallas import tpu as pltpu

INPUT_SIZE = 16
OBS_EMBED_SIZE = 32
NUM_RNN_UNITS = 32
AC_HIDDEN_LAYER_SIZE = 32
ACTION_SPACE_SIZE = 4

# ---- packed parameter slab layout (rows x 128 lanes, f32) -------------------
SLAB_COLS = 128
R_EMB = 0                                   # rows   0: 16  W_emb   (16,  32)
R_GATE = R_EMB + INPUT_SIZE                 # rows  16: 80  W_gate  (64, 128)
R_AC1 = R_GATE + OBS_EMBED_SIZE + NUM_RNN_UNITS   # rows 80:112  W_ac1 (32, 64)
R_HEAD = R_AC1 + NUM_RNN_UNITS              # rows 112:176  W_head  (64, 128)
R_B_EMB = R_HEAD + 2 * AC_HIDDEN_LAYER_SIZE  # row 176  b_emb  (32,)
R_B_GATE = R_B_EMB + 1                       # row 177  b_gate (128,)
R_B_AC1 = R_B_GATE + 1                       # row 178  b_ac1  (64,)
R_B_HEAD = R_B_AC1 + 1                       # row 179  b_head (128,)
SLAB_ROWS = 184                              # pad to multiple of 8 sublanes

OUT_WIDTH = 128                              # lane-dense packed output row


def gru_net_kernel(obs_ref, h_ref, p_ref, out_ref):
    f32 = jnp.float32
    H = NUM_RNN_UNITS
    A = AC_HIDDEN_LAYER_SIZE
    NA = ACTION_SPACE_SIZE

    x = obs_ref[...]                                      # (1, 16)
    h = h_ref[...]                                        # (1, 32)

    # --- static slices of the single VMEM parameter slab ---
    we = p_ref[R_EMB:R_EMB + INPUT_SIZE, 0:OBS_EMBED_SIZE]          # (16, 32)
    wg = p_ref[R_GATE:R_GATE + OBS_EMBED_SIZE + H, :]               # (64, 128)
    wac1 = p_ref[R_AC1:R_AC1 + H, 0:2 * A]                          # (32, 64)
    whead = p_ref[R_HEAD:R_HEAD + 2 * A, :]                         # (64, 128)
    be = p_ref[R_B_EMB:R_B_EMB + 1, 0:OBS_EMBED_SIZE]               # (1, 32)
    bg = p_ref[R_B_GATE:R_B_GATE + 1, :]                            # (1, 128)
    bac1 = p_ref[R_B_AC1:R_B_AC1 + 1, 0:2 * A]                      # (1, 64)
    bhead = p_ref[R_B_HEAD:R_B_HEAD + 1, :]                         # (1, 128)

    # --- observation embedding (LinearLayer) ---
    e = jnp.dot(x, we, preferred_element_type=f32) + be             # (1, 32)

    # --- GRUCell: ONE fused gate matmul on [e | h] ---
    xh = jnp.concatenate([e, h], axis=-1)                           # (1, 64)
    g = jnp.dot(xh, wg, preferred_element_type=f32) + bg            # (1, 128)
    r = jax.nn.sigmoid(g[:, 0:H])
    z = jax.nn.sigmoid(g[:, H:2 * H])
    gi_n = g[:, 2 * H:3 * H]
    gh_n = g[:, 3 * H:4 * H]
    n = jnp.tanh(gi_n + r * gh_n)
    h_new = (1.0 - z) * n + z * h                                   # (1, 32)

    # --- fused actor/critic hidden layers + fused block-diagonal heads ---
    ac1 = jnp.tanh(jnp.dot(h_new, wac1, preferred_element_type=f32) + bac1)  # (1,64)
    head = jnp.dot(ac1, whead, preferred_element_type=f32) + bhead           # (1,128)
    logits = head[:, 0:NA]                                          # (1, 4)
    value = head[:, NA:NA + 1]                                      # (1, 1)

    m = jnp.max(logits, axis=-1, keepdims=True)
    p = jnp.exp(logits - m)
    policy = p * pl.reciprocal(jnp.sum(p, axis=-1, keepdims=True), approx=True)

    # --- single lane-dense (1,128) output row: [policy | value | state | pad] ---
    pad = jnp.zeros((1, OUT_WIDTH - NA - 1 - H), f32)
    out_ref[...] = jnp.concatenate([policy, value, h_new, pad], axis=-1)


def make_params(key):
    """Deterministic 'natural' (unfused) parameters, PyTorch-equivalent shapes
    stored as (in, out); GRU gates packed (3, in, H) in order (r, z, n)."""
    ks = jax.random.split(key, 16)

    def u(k, shape, fan_in):
        bound = 1.0 / jnp.sqrt(jnp.float32(fan_in))
        return jax.random.uniform(k, shape, jnp.float32, -bound, bound)

    H, E, D, A, NA = (NUM_RNN_UNITS, OBS_EMBED_SIZE, INPUT_SIZE,
                      AC_HIDDEN_LAYER_SIZE, ACTION_SPACE_SIZE)
    return dict(
        we=u(ks[0], (D, E), D),          be=u(ks[1], (1, E), D),
        wih=u(ks[2], (3, E, H), E),      bih=u(ks[3], (3, 1, H), E),
        whh=u(ks[4], (3, H, H), H),      bhh=u(ks[5], (3, 1, H), H),
        wa1=u(ks[6], (H, A), H),         ba1=u(ks[7], (1, A), H),
        wa2=u(ks[8], (A, NA), A),        ba2=u(ks[9], (1, NA), A),
        wc1=u(ks[10], (H, A), H),        bc1=u(ks[11], (1, A), H),
        wc2=u(ks[12], (A, 1), A),        bc2=u(ks[13], (1, 1), A),
    )


def pack_params(p):
    """Build the single (184,128) f32 parameter slab (host-side, once)."""
    H, E, D, A, NA = (NUM_RNN_UNITS, OBS_EMBED_SIZE, INPUT_SIZE,
                      AC_HIDDEN_LAYER_SIZE, ACTION_SPACE_SIZE)
    slab = jnp.zeros((SLAB_ROWS, SLAB_COLS), jnp.float32)

    # embedding weight
    slab = slab.at[R_EMB:R_EMB + D, 0:E].set(p["we"])

    # fused GRU gate weight (E+H, 4H) -- off-blocks stay zero
    wg = jnp.zeros((E + H, 4 * H), jnp.float32)
    wg = wg.at[0:E, 0:H].set(p["wih"][0])
    wg = wg.at[E:E + H, 0:H].set(p["whh"][0])
    wg = wg.at[0:E, H:2 * H].set(p["wih"][1])
    wg = wg.at[E:E + H, H:2 * H].set(p["whh"][1])
    wg = wg.at[0:E, 2 * H:3 * H].set(p["wih"][2])
    wg = wg.at[E:E + H, 3 * H:4 * H].set(p["whh"][2])
    slab = slab.at[R_GATE:R_GATE + E + H, 0:4 * H].set(wg)

    # fused actor/critic first layers [Wa1 | Wc1]
    slab = slab.at[R_AC1:R_AC1 + H, 0:A].set(p["wa1"])
    slab = slab.at[R_AC1:R_AC1 + H, A:2 * A].set(p["wc1"])

    # fused block-diagonal output heads
    slab = slab.at[R_HEAD:R_HEAD + A, 0:NA].set(p["wa2"])
    slab = slab.at[R_HEAD + A:R_HEAD + 2 * A, NA:NA + 1].set(p["wc2"])

    # biases
    slab = slab.at[R_B_EMB, 0:E].set(p["be"][0])
    bgate = jnp.zeros((4 * H,), jnp.float32)
    bgate = bgate.at[0:H].set(p["bih"][0, 0] + p["bhh"][0, 0])
    bgate = bgate.at[H:2 * H].set(p["bih"][1, 0] + p["bhh"][1, 0])
    bgate = bgate.at[2 * H:3 * H].set(p["bih"][2, 0])
    bgate = bgate.at[3 * H:4 * H].set(p["bhh"][2, 0])
    slab = slab.at[R_B_GATE, 0:4 * H].set(bgate)
    slab = slab.at[R_B_AC1, 0:A].set(p["ba1"][0])
    slab = slab.at[R_B_AC1, A:2 * A].set(p["bc1"][0])
    slab = slab.at[R_B_HEAD, 0:NA].set(p["ba2"][0])
    slab = slab.at[R_B_HEAD, NA].set(p["bc2"][0, 0])
    return slab


def gru_network_forward(obs, old_state, param_slab):
    """obs: (INPUT_SIZE,) f32; old_state: (1, NUM_RNN_UNITS) f32;
    param_slab: (184,128) f32 from pack_params()."""
    obs2d = obs.reshape(1, INPUT_SIZE).astype(jnp.float32)    # unsqueeze(0)
    vmem = pl.BlockSpec(memory_space=pltpu.MemorySpace.VMEM)
    out = pl.pallas_call(
        gru_net_kernel,
        out_shape=jax.ShapeDtypeStruct((1, OUT_WIDTH), jnp.float32),
        in_specs=[vmem, vmem, vmem],
        out_specs=vmem,
    )(obs2d, old_state.astype(jnp.float32), param_slab)
    NA = ACTION_SPACE_SIZE
    policy = out[:, 0:NA]
    value = out[:, NA:NA + 1]
    new_state = out[:, NA + 1:NA + 1 + NUM_RNN_UNITS]
    return policy, value, new_state


def reference_forward(obs, old_state, p):
    """Pure-JAX reference of the original (unfused) forward."""
    x = obs.reshape(1, INPUT_SIZE)
    e = x @ p["we"] + p["be"]
    h = old_state
    gi = [e @ p["wih"][g] + p["bih"][g] for g in range(3)]
    gh = [h @ p["whh"][g] + p["bhh"][g] for g in range(3)]
    r = jax.nn.sigmoid(gi[0] + gh[0])
    z = jax.nn.sigmoid(gi[1] + gh[1])
    n = jnp.tanh(gi[2] + r * gh[2])
    h_new = (1.0 - z) * n + z * h
    a1 = jnp.tanh(h_new @ p["wa1"] + p["ba1"])
    policy = jax.nn.softmax(a1 @ p["wa2"] + p["ba2"], axis=-1)
    c1 = jnp.tanh(h_new @ p["wc1"] + p["bc1"])
    value = c1 @ p["wc2"] + p["bc2"]
    return policy, value, h_new


if __name__ == "__main__":
    key = jax.random.PRNGKey(0)
    k_par, k_obs = jax.random.split(key, 2)
    params = make_params(k_par)
    slab = jax.block_until_ready(pack_params(params))       # packed once
    obs = jax.random.normal(k_obs, (INPUT_SIZE,), jnp.float32)
    old_state = jnp.zeros((1, NUM_RNN_UNITS), jnp.float32)   # init_state()

    policy, value, new_state = jax.block_until_ready(
        gru_network_forward(obs, old_state, slab))

    ref_policy, ref_value, ref_state = reference_forward(obs, old_state, params)
    assert policy.shape == (1, ACTION_SPACE_SIZE)
    assert value.shape == (1, 1)
    assert new_state.shape == (1, NUM_RNN_UNITS)
    assert jnp.allclose(policy, ref_policy, rtol=1e-3, atol=1e-3)
    assert jnp.allclose(value, ref_value, rtol=1e-3, atol=1e-3)
    assert jnp.allclose(new_state, ref_state, rtol=1e-3, atol=1e-3)

    print("KERNEL_OK")
</pallas_src>

<mosaic_0001>
module attributes {stable_mosaic.version = 11 : i64} {
  func.func @gru_net_kernel(%arg0: memref<1x16xf32, #tpu.memory_space<vmem>>, %arg1: memref<1x32xf32, #tpu.memory_space<vmem>>, %arg2: memref<184x128xf32, #tpu.memory_space<vmem>>, %arg3: memref<1x128xf32, #tpu.memory_space<vmem>>) attributes {dimension_semantics = [], scalar_prefetch = 0 : i64, scratch_operands = 0 : i64, tpu.core_type = #tpu.core_type<tc>} {
    %c0 = arith.constant 0 : index
    %c0_0 = arith.constant 0 : index
    %0 = vector.load %arg0[%c0, %c0_0] : memref<1x16xf32, #tpu.memory_space<vmem>>, vector<1x16xf32>
    %c0_1 = arith.constant 0 : index
    %c0_2 = arith.constant 0 : index
    %1 = vector.load %arg1[%c0_1, %c0_2] : memref<1x32xf32, #tpu.memory_space<vmem>>, vector<1x32xf32>
    %c0_3 = arith.constant 0 : index
    %c0_4 = arith.constant 0 : index
    %2 = vector.load %arg2[%c0_3, %c0_4] : memref<184x128xf32, #tpu.memory_space<vmem>>, vector<16x32xf32>
    %c16 = arith.constant 16 : index
    %c0_5 = arith.constant 0 : index
    %3 = vector.load %arg2[%c16, %c0_5] : memref<184x128xf32, #tpu.memory_space<vmem>>, vector<64x128xf32>
    %c80 = arith.constant 80 : index
    %c0_6 = arith.constant 0 : index
    %4 = vector.load %arg2[%c80, %c0_6] : memref<184x128xf32, #tpu.memory_space<vmem>>, vector<32x64xf32>
    %c112 = arith.constant 112 : index
    %c0_7 = arith.constant 0 : index
    %5 = vector.load %arg2[%c112, %c0_7] : memref<184x128xf32, #tpu.memory_space<vmem>>, vector<64x128xf32>
    %c176 = arith.constant 176 : index
    %c0_8 = arith.constant 0 : index
    %6 = vector.load %arg2[%c176, %c0_8] : memref<184x128xf32, #tpu.memory_space<vmem>>, vector<1x32xf32>
    %c177 = arith.constant 177 : index
    %c0_9 = arith.constant 0 : index
    %7 = vector.load %arg2[%c177, %c0_9] : memref<184x128xf32, #tpu.memory_space<vmem>>, vector<1x128xf32>
    %c178 = arith.constant 178 : index
    %c0_10 = arith.constant 0 : index
    %8 = vector.load %arg2[%c178, %c0_10] : memref<184x128xf32, #tpu.memory_space<vmem>>, vector<1x64xf32>
    %c179 = arith.constant 179 : index
    %c0_11 = arith.constant 0 : index
    %9 = vector.load %arg2[%c179, %c0_11] : memref<184x128xf32, #tpu.memory_space<vmem>>, vector<1x128xf32>
    %cst = arith.constant dense<0.000000e+00> : vector<1x32xf32>
    %10 = tpu.matmul %0, %2, %cst {dimension_numbers = #tpu.dot_dimension_numbers<[1], [0], [0], [1], [0, 0, 1, 1], [], []>} : vector<1x16xf32>, vector<16x32xf32>, vector<1x32xf32> -> vector<1x32xf32>
    %11 = arith.addf %10, %6 : vector<1x32xf32>
    %12 = tpu.concatenate %11, %1 in 1 : vector<1x32xf32>, vector<1x32xf32> -> vector<1x64xf32>
    %cst_12 = arith.constant dense<0.000000e+00> : vector<1x128xf32>
    %13 = tpu.matmul %12, %3, %cst_12 {dimension_numbers = #tpu.dot_dimension_numbers<[1], [0], [0], [1], [0, 0, 1, 1], [], []>} : vector<1x64xf32>, vector<64x128xf32>, vector<1x128xf32> -> vector<1x128xf32>
    %14 = arith.addf %13, %7 : vector<1x128xf32>
    %15 = vector.extract_strided_slice %14 {offsets = [0, 0], sizes = [1, 32], strides = [1, 1]} : vector<1x128xf32> to vector<1x32xf32>
    %16 = arith.negf %15 : vector<1x32xf32>
    %17 = math.exp %16 : vector<1x32xf32>
    %cst_13 = arith.constant 1.000000e+00 : f32
    %18 = vector.broadcast %cst_13 : f32 to vector<1x32xf32>
    %19 = arith.addf %18, %17 : vector<1x32xf32>
    %20 = arith.divf %18, %19 : vector<1x32xf32>
    %21 = vector.extract_strided_slice %14 {offsets = [0, 32], sizes = [1, 32], strides = [1, 1]} : vector<1x128xf32> to vector<1x32xf32>
    %22 = arith.negf %21 : vector<1x32xf32>
    %23 = math.exp %22 : vector<1x32xf32>
    %cst_14 = arith.constant 1.000000e+00 : f32
    %24 = vector.broadcast %cst_14 : f32 to vector<1x32xf32>
    %25 = arith.addf %24, %23 : vector<1x32xf32>
    %26 = arith.divf %24, %25 : vector<1x32xf32>
    %27 = vector.extract_strided_slice %14 {offsets = [0, 64], sizes = [1, 32], strides = [1, 1]} : vector<1x128xf32> to vector<1x32xf32>
    %28 = vector.extract_strided_slice %14 {offsets = [0, 96], sizes = [1, 32], strides = [1, 1]} : vector<1x128xf32> to vector<1x32xf32>
    %29 = arith.mulf %20, %28 : vector<1x32xf32>
    %30 = arith.addf %27, %29 : vector<1x32xf32>
    %31 = math.tanh %30 : vector<1x32xf32>
    %cst_15 = arith.constant 1.000000e+00 : f32
    %32 = vector.broadcast %cst_15 : f32 to vector<1x32xf32>
    %33 = arith.subf %32, %26 : vector<1x32xf32>
    %34 = arith.mulf %33, %31 : vector<1x32xf32>
    %35 = arith.mulf %26, %1 : vector<1x32xf32>
    %36 = arith.addf %34, %35 : vector<1x32xf32>
    %cst_16 = arith.constant dense<0.000000e+00> : vector<1x64xf32>
    %37 = tpu.matmul %36, %4, %cst_16 {dimension_numbers = #tpu.dot_dimension_numbers<[1], [0], [0], [1], [0, 0, 1, 1], [], []>} : vector<1x32xf32>, vector<32x64xf32>, vector<1x64xf32> -> vector<1x64xf32>
    %38 = arith.addf %37, %8 : vector<1x64xf32>
    %39 = math.tanh %38 : vector<1x64xf32>
    %cst_17 = arith.constant dense<0.000000e+00> : vector<1x128xf32>
    %40 = tpu.matmul %39, %5, %cst_17 {dimension_numbers = #tpu.dot_dimension_numbers<[1], [0], [0], [1], [0, 0, 1, 1], [], []>} : vector<1x64xf32>, vector<64x128xf32>, vector<1x128xf32> -> vector<1x128xf32>
    %41 = arith.addf %40, %9 : vector<1x128xf32>
    %42 = vector.extract_strided_slice %41 {offsets = [0, 0], sizes = [1, 4], strides = [1, 1]} : vector<1x128xf32> to vector<1x4xf32>
    %43 = vector.extract_strided_slice %41 {offsets = [0, 4], sizes = [1, 1], strides = [1, 1]} : vector<1x128xf32> to vector<1x1xf32>
    %cst_18 = arith.constant dense<0xFF800000> : vector<1xf32>
    %44 = vector.multi_reduction <maximumf>, %42, %cst_18 [1] : vector<1x4xf32> to vector<1xf32>
    %45 = vector.shape_cast %44 : vector<1xf32> to vector<1x1xf32>
    %46 = vector.broadcast %45 : vector<1x1xf32> to vector<1x4xf32>
    %47 = arith.subf %42, %46 : vector<1x4xf32>
    %48 = math.exp %47 : vector<1x4xf32>
    %cst_19 = arith.constant dense<0.000000e+00> : vector<1xf32>
    %49 = vector.multi_reduction <add>, %48, %cst_19 [1] : vector<1x4xf32> to vector<1xf32>
    %50 = vector.shape_cast %49 : vector<1xf32> to vector<1x1xf32>
    %51 = tpu.reciprocal %50 {approx = true} : vector<1x1xf32> -> vector<1x1xf32>
    %52 = vector.broadcast %51 : vector<1x1xf32> to vector<1x4xf32>
    %53 = arith.mulf %48, %52 : vector<1x4xf32>
    %cst_20 = arith.constant 0.000000e+00 : f32
    %54 = vector.broadcast %cst_20 : f32 to vector<1x91xf32>
    %55 = tpu.concatenate %53, %43, %36, %54 in 1 : vector<1x4xf32>, vector<1x1xf32>, vector<1x32xf32>, vector<1x91xf32> -> vector<1x128xf32>
    %c0_21 = arith.constant 0 : index
    %c0_22 = arith.constant 0 : index
    %56 = vector.load %arg3[%c0_21, %c0_22] : memref<1x128xf32, #tpu.memory_space<vmem>>, vector<1x128xf32>
    tpu.vector_store %arg3[%c0_21, %c0_22], %55 {strides = array<i32>} : memref<1x128xf32, #tpu.memory_space<vmem>>, vector<1x128xf32>,
    return
  }
}

</mosaic_0001>

<bundles_post_ra>
// kernel: tpu_custom_call.1
= control target key start
LH: loop header
LB: loop body
LE: loop exit
PB: predicated region body
PF: predicated region fallthrough
CT: control target
= control target key end

     0   :  { %8 = vsyncpa [#allocation3], 0  ;;  %s695_s0 = inlined_call_operand.hbm [shape: f32[1,16], index: 0, kind: input, shape index: {}]   ;;  %s696_s1 = inlined_call_operand.vmem [shape: f32[1,32], index: 1, kind: input, shape index: {}]   ;;  %s697_s2 = inlined_call_operand.hbm [shape: f32[184,128], index: 2, kind: input, shape index: {}]   ;;  %s698_s3 = inlined_call_operand.hbm [shape: f32[1,128], index: 3, kind: output, shape index: {}]  }
   0x1   :  { %9 = vsyncpa [#allocation6], 0 }
   0x2   :  { %10 = vsyncpa [#allocation4], 0  ;;  %s616_s12 = smov [#allocation2]   ;;  %s617_s14 = smov [#allocation5]  }
   0x3   :  { %s17_s13 = sshll.u32 %s616_s12, 4  ;;  %s28_s15 = sshll.u32 %s617_s14, 4  ;;  %s18_s13 = int_to_ptr.vmem [resolvable:$true] %s17_s13  ;;  %s29_s15 = int_to_ptr.vmem [resolvable:$true] %s28_s15 }
   0x4   :  { %s558_s16 = scalar_lea.vmem %s18_s13, 16  ;;  %s562_s17 = scalar_lea.vmem %s18_s13, 32 }
   0x5   :  { %p559_p0 = scmp.ne.s32.totalorder %s18_s13, %s558_s16  ;;  %p563_p1 = scmp.lt.s32.totalorder %s18_s13, %s18_s13 }
   0x6   :  { %p564_p2 = scmp.lt.s32.totalorder %s562_s17, %s558_s16 }
   0x8   :  { %p565_p3 = por %p564_p2, %p563_p1 }
   0xa   :  { %p566_p4 = pnand %p565_p3, %p559_p0 }
   0xc   :  { %569 = shalt.err (!%p566_p4)
}
   0xd   :  { %20 = dma.hbm_to_vmem [thread:$0]  %s695_s0, 16, %s18_s13, [#allocation3]  }
   0xe   :  { %s578_s20 = scalar_lea.vmem %s29_s15, 2944  ;;  %p583_p6 = scmp.lt.s32.totalorder %s29_s15, %s29_s15 }
   0xf   :  { %p579_p5 = scmp.ne.s32.totalorder %s29_s15, %s578_s20  ;;  %p584_p7 = scmp.lt.s32.totalorder %s578_s20, %s578_s20 }
  0x11   :  { %p585_p8 = por %p584_p7, %p583_p6 }
  0x13   :  { %p586_p9 = pnand %p585_p8, %p579_p5 }
  0x15   :  { %589 = shalt.err (!%p586_p9)
}
  0x16   :  { %s618_s21 = smov 128   ;;  %s619_s22 = smov 8  }
  0x17   :  { %34 = dma.hbm_to_vmem [thread:$0]  %s697_s2, 2944, %s29_s15, [#allocation6], %s618_s21, %s618_s21, %s619_s22  }
  0x18   :  { %610 = dma.done.wait [#allocation3], 16  }
  0x19   :  { %611 = vsyncadd [#allocation3], 4294967280 }
  0x1a   :  { %612 = dma.done.wait [#allocation6], 2944  }
  0x1b   :  { %613 = vsyncadd [#allocation6], 4294964352  ;;  %v620_v0 = vmov 0.0   ;;  %vm621_vm0 = vmmov 0   ;;  %v44_v1 = vld [vmem:[#allocation5 + $0x8] sm:$0xff]  ;;  %v43_v2 = vld [vmem:[#allocation5] sm:$0xff] }
  0x1c   :  { %471 = vmatprep.subr.mxu1 %v620_v0  ;;  %475 = vmatprep.mubr.msk.f32.mxu1 %vm621_vm0, %v620_v0  ;;  %v41_v3 = vld [vmem:[#allocation2] sm:$0x1]  ;;  %vm69_vm1 = vcmask 130048   ;;  %s622_s25 = smov 32   ;;  %v52_v5 = vld [vmem:[#allocation5 + $0x48] sm:$0xff]  ;;  %v51_v6 = vld [vmem:[#allocation5 + $0x40] sm:$0xff] }
  0x1d   :  { %497 = vmatprep.subr.mxu0 %v620_v0  ;;  %505 = vmatprep.mubr.msk.f32.mxu0 %vm621_vm0, %v620_v0  ;;  %v440_v4 = vld [vmem:[%s696_s1] ss:$0 sm:$0xff]  ;;  %v49_v8 = vld [vmem:[#allocation5 + $0x30] sm:$0xff]  ;;  %v48_v9 = vld [vmem:[#allocation5 + $0x28] sm:$0xff]  ;;  %vm151_vm2 = vcmask 261120   ;;  %vm153_vm3 = vcmask 523264  }
  0x1e   :  { %472 = vmatpush3.msra.mxu1 %v44_v1  ;;  %148 = vrot.lane.b32.xlu0 %v440_v4, %s622_s25  ;;  %v50_v7 = vld [vmem:[#allocation5 + $0x38] sm:$0xff]  ;;  %v47_v10 = vld [vmem:[#allocation5 + $0x20] sm:$0xff]  ;;  %v45_v12 = vld [vmem:[#allocation5 + $0x10] sm:$0xff]  ;;  %s623_s1 = smov 64   ;;  %s624_s26 = smov 96   ;;  %vm401_vm4 = vcmask 24576  }
  0x1f   :  { %473 = vmatprep.subr.mxu1 %v620_v0  ;;  %v46_v11 = vld [vmem:[#allocation5 + $0x18] sm:$0xff]  ;;  %v65_v13 = vld [vmem:[#allocation5 + $0xb0] sm:$0x1]  ;;  %v66_v19 = vld [vmem:[#allocation5 + $0xb1] sm:$0x1]  ;;  %s625_s27 = smov 101  }
  0x20   :  { %474 = vmatpush3.msra.mxu1 %v43_v2  ;;  %v56_v31 = vld [vmem:[#allocation5 + $0x68] sm:$0xff]  ;;  %v55_v32 = vld [vmem:[#allocation5 + $0x60] sm:$0xff]  ;;  %v54_v33 = vld [vmem:[#allocation5 + $0x58] sm:$0xff]  ;;  %vm416_vm5 = vcmask 31744   ;;  %vm418_vm6 = vcmask 39936   ;;  %s626_s28 = smov [#allocation7]  }
  0x21   :  { %476 = vmatmul.mubr.msk.f32.vlgmr.msra.gmra.mxu1 %vm69_vm1, %v41_v3  ;;  %478 = vmatprep.subr.mxu1 %v620_v0  ;;  %v53_v34 = vld [vmem:[#allocation5 + $0x50] sm:$0xff]  ;;  %v64_v42 = vld [vmem:[#allocation5 + $0xa8] sm:$0xff]  ;;  %v63_v43 = vld [vmem:[#allocation5 + $0xa0] sm:$0xff]  ;;  %s429_s29 = sshll.u32 %s626_s28, 4  ;;  %vm420_vm7 = vcmask 302080   ;;  %s430_s29 = int_to_ptr.vmem [resolvable:$true] %s429_s29 }
  0x22   :  { %479 = vmatpush3.msra.mxu1 %v52_v5  ;;  %494 = vmatprep.mubr.msk.f32.mxu1 %vm621_vm0, %v620_v0  ;;  %v62_v44 = vld [vmem:[#allocation5 + $0x98] sm:$0xff]  ;;  %v61_v45 = vld [vmem:[#allocation5 + $0x90] sm:$0xff]  ;;  %v60_v46 = vld [vmem:[#allocation5 + $0x88] sm:$0xff]  ;;  %s590_s30 = scalar_lea.vmem %s430_s29, 16  ;;  %s594_s4 = scalar_lea.vmem %s430_s29, 32 }
  0x23   :  { %480 = vmatprep.subr.mxu1 %v620_v0  ;;  %498 = vmatpush3.msra.mxu0 %v56_v31  ;;  %v59_v47 = vld [vmem:[#allocation5 + $0x80] sm:$0xff]  ;;  %v58_v48 = vld [vmem:[#allocation5 + $0x78] sm:$0xff]  ;;  %v57_v49 = vld [vmem:[#allocation5 + $0x70] sm:$0xff]  ;;  %p591_p10 = scmp.ne.s32.totalorder %s430_s29, %s590_s30  ;;  %p595_p11 = scmp.lt.s32.totalorder %s430_s29, %s430_s29 }
  0x24   :  { %481 = vmatpush3.msra.mxu1 %v51_v6  ;;  %499 = vmatprep.subr.mxu0 %v620_v0  ;;  %v67_v50 = vld [vmem:[#allocation5 + $0xb2] sm:$0x1]  ;;  %v68_v55 = vld [vmem:[#allocation5 + $0xb3] sm:$0x1]  ;;  %p596_p12 = scmp.lt.s32.totalorder %s594_s4, %s590_s30 }
  0x25   :  { %482 = vmatprep.subr.mxu1 %v620_v0  ;;  %500 = vmatpush3.msra.mxu0 %v55_v32 }
  0x26   :  { %483 = vmatpush3.msra.mxu1 %v50_v7  ;;  %501 = vmatprep.subr.mxu0 %v620_v0  ;;  %p597_p13 = por %p596_p12, %p595_p11 }
  0x27   :  { %484 = vmatprep.subr.mxu1 %v620_v0  ;;  %502 = vmatpush3.msra.mxu0 %v54_v33 }
  0x28   :  { %485 = vmatpush3.msra.mxu1 %v49_v8  ;;  %503 = vmatprep.subr.mxu0 %v620_v0  ;;  %p598_p0 = pnand %p597_p13, %p591_p10 }
  0x29   :  { %486 = vmatprep.subr.mxu1 %v620_v0  ;;  %504 = vmatpush3.msra.mxu0 %v53_v34 }
  0x2a   :  { %487 = vmatpush3.msra.mxu1 %v48_v9  ;;  %508 = vmatprep.subr.mxu0 %v620_v0 }
  0x2b   :  { %488 = vmatprep.subr.mxu1 %v620_v0 }
  0x2c   :  { %489 = vmatpush3.msra.mxu1 %v47_v10 }
  0x2d   :  { %490 = vmatprep.subr.mxu1 %v620_v0 }
  0x2e   :  { %491 = vmatpush3.msra.mxu1 %v46_v11 }
  0x2f   :  { %492 = vmatprep.subr.mxu1 %v620_v0 }
  0x30   :  { %493 = vmatpush3.msra.mxu1 %v45_v12 }
  0x90   :  { %v149_v15 = vpop.permute.xlu0 %148 }
  0xe1   :  { %v139_v14 = vpop.f32.mrf.mxu1 }
  0xe2   :  { %v140_v16 = vadd.f32 %v139_v14, %v65_v13 }
  0xe3   :  { %v477_v17 = vpop.f32.mrf.mxu1 }
  0xe4   :  { %v152_v18 = vsel %vm151_vm2, %v140_v16, %v149_v15 }
  0xe5   :  { %495 = vmatmul.mubr.msk.f32.vlgmr.msra.gmra.mxu1 %vm153_vm3, %v152_v18 }
 0x1a5   :  { %v223_v20 = vpop.f32.mrf.mxu1 }
 0x1a6   :  { %v224_v21 = vadd.f32 %v223_v20, %v66_v19 }
 0x1a7   :  { %v496_v22 = vpop.f32.mrf.mxu1 }
 0x1a8   :  { %234 = vrot.lane.b32.xlu0 %v224_v21, %s622_s25  ;;  %v442_v23 = vmul.f32 -1.442695, %v224_v21 }
 0x1aa   :  { %538 = vpow2.f32 %v442_v23 }
 0x1b7   :  { %v539_v24 = vpop.eup %538 }
 0x1b8   :  { %v230_v25 = vadd.f32 1.0, %v539_v24 }
 0x1ba   :  { %540 = vrcp.f32 %v230_v25 }
 0x1c7   :  { %v541_v26 = vpop.eup %540 }
 0x1c8   :  { %v244_v36 = vsub.f32 1.0, %v541_v26  ;;  %v250_v38 = vmul.f32 %v541_v26, %v149_v15 }
 0x21a   :  { %v235_v27 = vpop.permute.xlu0 %234 }
 0x21b   :  { %v237_v28 = vmul.f32 %v541_v26, %v235_v27 }
 0x21d   :  { %239 = vrot.lane.b32.xlu1 %v237_v28, %s623_s1 }
 0x28f   :  { %v240_v29 = vpop.permute.xlu1 %239 }
 0x290   :  { %v242_v30 = vadd.f32 %v240_v29, %v224_v21 }
 0x292   :  { %542 = vtanh.f32 %v242_v30 }
 0x29f   :  { %v543_v35 = vpop.eup %542 }
 0x2a0   :  { %246 = vrot.lane.b32.xlu1 %v543_v35, %s624_s26 }
 0x312   :  { %v247_v37 = vpop.permute.xlu1 %246 }
 0x313   :  { %v249_v39 = vmul.f32 %v247_v37, %v244_v36 }
 0x315   :  { %v251_v40 = vadd.f32 %v250_v38, %v249_v39 }
 0x317   :  { %253 = vrot.lane.b32.xlu0 %v251_v40, %s624_s26 }
 0x389   :  { %v254_v41 = vpop.permute.xlu0 %253 }
 0x38a   :  { %506 = vmatmul.mubr.msk.f32.vlgmr.msra.gmra.mxu0 %vm151_vm2, %v254_v41 }
 0x38b   :  { %524 = vmatprep.mubr.msk.f32.mxu0 %vm621_vm0, %v620_v0  ;;  %509 = vmatpush3.msra.mxu0 %v64_v42 }
 0x38c   :  { %510 = vmatprep.subr.mxu0 %v620_v0 }
 0x38d   :  { %511 = vmatpush3.msra.mxu0 %v63_v43 }
 0x38e   :  { %512 = vmatprep.subr.mxu0 %v620_v0 }
 0x38f   :  { %513 = vmatpush3.msra.mxu0 %v62_v44 }
 0x390   :  { %514 = vmatprep.subr.mxu0 %v620_v0 }
 0x391   :  { %515 = vmatpush3.msra.mxu0 %v61_v45 }
 0x392   :  { %516 = vmatprep.subr.mxu0 %v620_v0 }
 0x393   :  { %517 = vmatpush3.msra.mxu0 %v60_v46 }
 0x394   :  { %518 = vmatprep.subr.mxu0 %v620_v0 }
 0x395   :  { %519 = vmatpush3.msra.mxu0 %v59_v47 }
 0x396   :  { %520 = vmatprep.subr.mxu0 %v620_v0 }
 0x397   :  { %521 = vmatpush3.msra.mxu0 %v58_v48 }
 0x398   :  { %522 = vmatprep.subr.mxu0 %v620_v0 }
 0x399   :  { %523 = vmatpush3.msra.mxu0 %v57_v49 }
 0x44a   :  { %v323_v51 = vpop.f32.mrf.mxu0 }
 0x44b   :  { %v324_v52 = vadd.f32 %v323_v51, %v67_v50 }
 0x44c   :  { %v507_v53 = vpop.f32.mrf.mxu0 }
 0x44d   :  { %544 = vtanh.f32 %v324_v52 }
 0x45a   :  { %v545_v54 = vpop.eup %544 }
 0x45b   :  { %525 = vmatmul.mubr.msk.f32.vlgmr.msra.gmra.mxu0 %vm153_vm3, %v545_v54 }
 0x51b   :  { %v397_v56 = vpop.f32.mrf.mxu0 }
 0x51c   :  { %v398_v57 = vadd.f32 %v397_v56, %v68_v55 }
 0x51d   :  { %v526_v58 = vpop.f32.mrf.mxu0 }
 0x51e   :  { %v402_v59 = vsel %vm401_vm4, %v398_v57, -inf }
 0x51f   :  { %403 = vmax.xlane.f32.xlu1 %v402_v59 }
 0x5a8   :  { %v404_v60 = vpop.xlane.xlu1 %403 }
 0x5a9   :  { %v405_v61 = vsub.f32 %v398_v57, %v404_v60 }
 0x5ab   :  { %v406_v62 = vmul.f32 1.442695, %v405_v61 }
 0x5ad   :  { %546 = vpow2.f32 %v406_v62 }
 0x5ba   :  { %v547_v63 = vpop.eup %546 }
 0x5bb   :  { %v408_v0 = vsel %vm401_vm4, %v547_v63, 0.0 }
 0x5bc   :  { %409 = vadd.xlane.f32.xlu0 %v408_v0 }
 0x5d2   :  { %413 = vrot.lane.b32.xlu0 %v251_v40, %s625_s27 }
 0x645   :  { %v410_v1 = vpop.xlane.xlu0 %409 }
 0x646   :  { %548 = vrcp.f32 %v410_v1 }
 0x649   :  { %v414_v5 = vpop.permute.xlu0 %413 }
 0x653   :  { %v549_v2 = vpop.eup %548 }
 0x654   :  { %v412_v3 = vmul.f32 %v549_v2, %v547_v63 }
 0x656   :  { %v417_v4 = vsel %vm416_vm5, %v412_v3, %v398_v57 }
 0x657   :  { %v419_v6 = vsel %vm418_vm6, %v417_v4, %v414_v5 }
 0x658   :  { %v421_v7 = vsel %vm420_vm7, %v419_v6, 0.0 }
 0x659   :  { %422 = vst [vmem:[#allocation7] sm:$0x1] %v421_v7 }
 0x65a   :  { %601 = shalt.err (!%p598_p0)
}
 0x65b   :  { %432 = dma.vmem_to_hbm [thread:$0]  %s430_s29, 16, %s698_s3, [#allocation4]  }
 0x65c   :  { %614 = dma.done.wait [#allocation4], 16  }
 0x65d   :  { %615 = vsyncadd [#allocation4], 4294967280 }
 0x65e   :  { %436 = vsyncpa [#allocation3], 1 }
 0x65f   :  { %437 = vsyncpa [#allocation6], 1 }
 0x660   :  { %438 = vsyncpa [#allocation4], 1 }

</bundles_post_ra>
